<compile_context>
chip_gen: v7x
topology: tpu7x:2x2x1
jax: 0.10.0
libtpu: 0.0.40
codegen_flags: <defaults>
</compile_context>

<pallas_src>
from functools import partial

import jax
import jax.numpy as jnp
from jax import lax
from jax.experimental import pallas as pl
from jax.experimental.pallas import tpu as pltpu


def _mlp_kernel(x_ref, w1_ref, b1_ref, w2_ref, o_ref):
    # x_ref : (tb, K)      native batch-major input tile (K = 13, full minor dim)
    # w1_ref: (H_pad, K)   VMEM-resident hidden weights (rows >= H are zero)
    # b1_ref: (H_pad, 1)   hidden bias column (row H carries 1.0 for the b2 trick)
    # w2_ref: (H_pad, 1)   output weight column (row H carries b2)
    # o_ref : (1, tb)      lane-dense logits row (batch on lanes)
    #
    # Layer 1 on the MXU, contracting the minor (feature) dims of both operands:
    #   h[j, b] = sum_k w1[j, k] * x[b, k]   ->  (H_pad, tb)
    h = lax.dot_general(
        w1_ref[...], x_ref[...],
        dimension_numbers=(((1,), (1,)), ((), ())),
        preferred_element_type=jnp.float32)
    h = jnp.maximum(h + b1_ref[...], 0.0)            # bias (lane-broadcast) + ReLU on VPU
    # Layer 2 (N=1): VPU multiply + sublane reduction; b2 rides in the extra row.
    o_ref[...] = jnp.sum(h * w2_ref[...], axis=0, keepdims=True)


def _round_up(v, m):
    return ((v + m - 1) // m) * m


@partial(jax.jit, static_argnames=("block_b",))
def binary_classification_forward(x, w1, b1, w2, b2, *, block_b=16384):
    """Pallas forward pass.

    x  : (B, 13) float32
    w1 : (H, 13) float32   (PyTorch layout [out, in])
    b1 : (H,)    float32
    w2 : (1, H)  float32
    b2 : (1,)    float32
    returns (B, 1) float32 logits
    """
    B, K = x.shape
    H = w1.shape[0]

    # One extra hidden row carries b2; pad H to a sublane multiple.
    H_pad = _round_up(H + 1, 8)

    # Batch tile: at least 128 lanes, at most block_b, and capped at ~B/2 so the
    # grid has >=2 "parallel" steps for large B (v7x megacore sharding).
    tb = max(128, min(_round_up(block_b, 128), _round_up(pl.cdiv(B, 2), 128)))
    grid_b = pl.cdiv(B, tb)          # ragged last block handled by Pallas

    # Tiny padded parameter tensors (13*16 floats — negligible, built once).
    w1_p = jnp.zeros((H_pad, K), jnp.float32).at[:H, :].set(w1)
    b1_p = jnp.zeros((H_pad, 1), jnp.float32).at[:H, 0].set(b1).at[H, 0].set(1.0)
    w2_p = jnp.zeros((H_pad, 1), jnp.float32).at[:H, 0].set(w2[0]).at[H, 0].set(b2[0])

    # The native (tb, K) input tile lane-pads K=13 -> 128 in VMEM: budget for it.
    tile_bytes = tb * 128 * 4
    vmem_limit = int(min(56 << 20, max(16 << 20, 3 * tile_bytes + (8 << 20))))

    cost = pl.CostEstimate(
        flops=int(2 * B * H_pad * (K + 1)),
        transcendentals=0,
        bytes_accessed=int(B * K * 4 + B * 4 + H_pad * (K + 2) * 4),
    )

    out = pl.pallas_call(
        _mlp_kernel,
        out_shape=jax.ShapeDtypeStruct((1, B), jnp.float32),
        grid=(grid_b,),
        in_specs=[
            # x: new native (tb, K) batch block per grid step (no wrapper transpose/pad)
            pl.BlockSpec((tb, K), lambda i: (i, 0)),
            # weights / biases: constant block index -> stay VMEM-resident
            pl.BlockSpec((H_pad, K), lambda i: (0, 0)),
            pl.BlockSpec((H_pad, 1), lambda i: (0, 0)),
            pl.BlockSpec((H_pad, 1), lambda i: (0, 0)),
        ],
        out_specs=pl.BlockSpec((1, tb), lambda i: (0, i)),
        compiler_params=pltpu.CompilerParams(
            dimension_semantics=("parallel",),
            vmem_limit_bytes=vmem_limit,
        ),
        cost_estimate=cost,
    )(x, w1_p, b1_p, w2_p)

    # Public (B, 1) contract of the PyTorch module ((1,B) -> (B,1) is a pure reshape).
    return out.reshape(B, 1)


def init_params(key, num_units=10, in_features=13):
    """Deterministic init mimicking PyTorch nn.Linear default (uniform ±1/sqrt(fan_in))."""
    k1, k2, k3, k4 = jax.random.split(key, 4)
    bound1 = 1.0 / jnp.sqrt(in_features)
    bound2 = 1.0 / jnp.sqrt(num_units)
    w1 = jax.random.uniform(k1, (num_units, in_features), jnp.float32, -bound1, bound1)
    b1 = jax.random.uniform(k2, (num_units,), jnp.float32, -bound1, bound1)
    w2 = jax.random.uniform(k3, (1, num_units), jnp.float32, -bound2, bound2)
    b2 = jax.random.uniform(k4, (1,), jnp.float32, -bound2, bound2)
    return w1, b1, w2, b2


def reference_forward(x, w1, b1, w2, b2):
    h = jnp.maximum(x @ w1.T + b1, 0.0)
    return h @ w2.T + b2


if __name__ == "__main__":
    key = jax.random.PRNGKey(0)
    kx, kp = jax.random.split(key)

    batch = 8
    in_features = 13
    num_units = 10

    x = jax.random.normal(kx, (batch, in_features), dtype=jnp.float32)
    w1, b1, w2, b2 = init_params(kp, num_units=num_units, in_features=in_features)

    out = binary_classification_forward(x, w1, b1, w2, b2)
    out = jax.block_until_ready(out)

    ref = reference_forward(x, w1, b1, w2, b2)
    assert out.shape == (batch, 1), out.shape
    assert jnp.allclose(out, ref, atol=1e-5, rtol=1e-5), (out, ref)

    # Larger, non-multiple batch: exercises the multi-step grid and the ragged
    # last block (1000 = 3*256 + 232) without any wrapper-side padding of x.
    x_big = jax.random.normal(kx, (1000, in_features), dtype=jnp.float32)
    out_big = jax.block_until_ready(
        binary_classification_forward(x_big, w1, b1, w2, b2, block_b=256))
    ref_big = reference_forward(x_big, w1, b1, w2, b2)
    assert out_big.shape == (1000, 1), out_big.shape
    assert jnp.allclose(out_big, ref_big, atol=1e-5, rtol=1e-5)

    print("KERNEL_OK")
</pallas_src>

<mosaic_0001>
module attributes {stable_mosaic.version = 11 : i64} {
  func.func @_mlp_kernel(%arg0: i32, %arg1: memref<128x13xf32, #tpu.memory_space<vmem>>, %arg2: memref<16x13xf32, #tpu.memory_space<vmem>>, %arg3: memref<16x1xf32, #tpu.memory_space<vmem>>, %arg4: memref<16x1xf32, #tpu.memory_space<vmem>>, %arg5: memref<1x128xf32, #tpu.memory_space<vmem>>) attributes {dimension_semantics = [#tpu.dimension_semantics<parallel>], iteration_bounds = array<i64: 1>, scalar_prefetch = 0 : i64, scratch_operands = 0 : i64, tpu.core_type = #tpu.core_type<tc>, window_params = [{transform_indices = @transform_0, window_bounds = array<i64: 128, 13>}, {pipeline_mode = #tpu.pipeline_mode<synchronous>, transform_indices = @transform_1, window_bounds = array<i64: 16, 13>}, {pipeline_mode = #tpu.pipeline_mode<synchronous>, transform_indices = @transform_2, window_bounds = array<i64: 16, 1>}, {pipeline_mode = #tpu.pipeline_mode<synchronous>, transform_indices = @transform_3, window_bounds = array<i64: 16, 1>}, {transform_indices = @transform_4, window_bounds = array<i64: 1, 128>}]} {
    %c0 = arith.constant 0 : index
    %c0_0 = arith.constant 0 : index
    %0 = vector.load %arg2[%c0, %c0_0] : memref<16x13xf32, #tpu.memory_space<vmem>>, vector<16x13xf32>
    %c0_1 = arith.constant 0 : index
    %c0_2 = arith.constant 0 : index
    %1 = vector.load %arg1[%c0_1, %c0_2] : memref<128x13xf32, #tpu.memory_space<vmem>>, vector<128x13xf32>
    %cst = arith.constant dense<0.000000e+00> : vector<16x128xf32>
    %2 = tpu.matmul %0, %1, %cst {dimension_numbers = #tpu.dot_dimension_numbers<[1], [1], [0], [0], [0, 0, 1, 0], [], []>} : vector<16x13xf32>, vector<128x13xf32>, vector<16x128xf32> -> vector<16x128xf32>
    %c0_3 = arith.constant 0 : index
    %c0_4 = arith.constant 0 : index
    %3 = vector.load %arg3[%c0_3, %c0_4] : memref<16x1xf32, #tpu.memory_space<vmem>>, vector<16x1xf32>
    %4 = vector.broadcast %3 : vector<16x1xf32> to vector<16x128xf32>
    %5 = arith.addf %2, %4 : vector<16x128xf32>
    %cst_5 = arith.constant 0.000000e+00 : f32
    %6 = vector.broadcast %cst_5 : f32 to vector<16x128xf32>
    %7 = arith.maximumf %5, %6 : vector<16x128xf32>
    %c0_6 = arith.constant 0 : index
    %c0_7 = arith.constant 0 : index
    %8 = vector.load %arg4[%c0_6, %c0_7] : memref<16x1xf32, #tpu.memory_space<vmem>>, vector<16x1xf32>
    %9 = vector.broadcast %8 : vector<16x1xf32> to vector<16x128xf32>
    %10 = arith.mulf %7, %9 : vector<16x128xf32>
    %cst_8 = arith.constant dense<0.000000e+00> : vector<128xf32>
    %11 = vector.multi_reduction <add>, %10, %cst_8 [0] : vector<16x128xf32> to vector<128xf32>
    %12 = vector.shape_cast %11 : vector<128xf32> to vector<1x128xf32>
    %c0_9 = arith.constant 0 : index
    %c0_10 = arith.constant 0 : index
    %13 = vector.load %arg5[%c0_9, %c0_10] : memref<1x128xf32, #tpu.memory_space<vmem>>, vector<1x128xf32>
    tpu.vector_store %arg5[%c0_9, %c0_10], %12 {strides = array<i32>} : memref<1x128xf32, #tpu.memory_space<vmem>>, vector<1x128xf32>,
    return
  }
  func.func @transform_0(%arg0: i32) -> (i32, i32) {
    %c0_i32 = arith.constant 0 : i32
    %c0_i32_0 = arith.constant 0 : i32
    return %arg0, %c0_i32 : i32, i32
  }
  func.func @transform_1(%arg0: i32) -> (i32, i32) {
    %c0_i32 = arith.constant 0 : i32
    %c0_i32_0 = arith.constant 0 : i32
    %c0_i32_1 = arith.constant 0 : i32
    return %c0_i32, %c0_i32_0 : i32, i32
  }
  func.func @transform_2(%arg0: i32) -> (i32, i32) {
    %c0_i32 = arith.constant 0 : i32
    %c0_i32_0 = arith.constant 0 : i32
    %c0_i32_1 = arith.constant 0 : i32
    return %c0_i32, %c0_i32_0 : i32, i32
  }
  func.func @transform_3(%arg0: i32) -> (i32, i32) {
    %c0_i32 = arith.constant 0 : i32
    %c0_i32_0 = arith.constant 0 : i32
    %c0_i32_1 = arith.constant 0 : i32
    return %c0_i32, %c0_i32_0 : i32, i32
  }
  func.func @transform_4(%arg0: i32) -> (i32, i32) {
    %c0_i32 = arith.constant 0 : i32
    %c0_i32_0 = arith.constant 0 : i32
    return %c0_i32, %arg0 : i32, i32
  }
}

</mosaic_0001>

<bundles_post_ra>
// kernel: binary_classification_forward.1
= control target key start
LH: loop header
LB: loop body
LE: loop exit
PB: predicated region body
PF: predicated region fallthrough
CT: control target
= control target key end

     0   :  { %vm48_vm0 = vcmask 105472   ;;  %v363_v6 = vmov 0   ;;  %s508_s0 = inlined_call_operand.vmem [shape: f32[8,13], index: 0, kind: input, shape index: {}]   ;;  %s509_s1 = inlined_call_operand.vmem [shape: f32[16,13], index: 1, kind: input, shape index: {}]   ;;  %s510_s2 = inlined_call_operand.vmem [shape: f32[16,1], index: 2, kind: input, shape index: {}]   ;;  %s511_s3 = inlined_call_operand.vmem [shape: f32[16,1], index: 3, kind: input, shape index: {}]   ;;  %s512_s4 = inlined_call_operand.hbm [shape: f32[1,8], index: 4, kind: output, shape index: {}]  }
   0x1   :  { %v20_v0 = vld [vmem:[%s508_s0] sm:$0xff]  ;;  %v21_v1 = vld [vmem:[%s508_s0 + $0x8] sm:$0xff]  ;;  %v22_v2 = vld [vmem:[%s508_s0 + $0x10] sm:$0xff]  ;;  %337 = vset.pattern.permute.xlu0 %v363_v6  ;;  %338 = vset.pattern.permute.xlu1 %v363_v6 }
   0x2   :  { %v287_v3 = vpack.c.bf16 %v21_v1, %v20_v0  ;;  %vm401_vm1 = vmpackc.low %vm48_vm0, %vm48_vm0  ;;  %v23_v5 = vld [vmem:[%s508_s0 + $0x18] sm:$0xff]  ;;  %v24_v8 = vld [vmem:[%s508_s0 + $0x20] sm:$0xff] }
   0x3   :  { %v293_v7 = vpack.c.bf16 %v23_v5, %v22_v2  ;;  %v18_v9 = vld [vmem:[%s509_s1] sm:$0xff]  ;;  %v25_v10 = vld [vmem:[%s508_s0 + $0x28] sm:$0xff] }
   0x4   :  { %289 = vmatprep.subr.msk.bf16.mxu0 %vm401_vm1, %v287_v3  ;;  %284 = vmatprep.mubr.msk.f32.mxu0 %vm48_vm0, %v18_v9  ;;  %v36_v11 = vld [vmem:[%s510_s2] sm:$0xff] }
   0x5   :  { %292 = vmatpush3.bf16.xpose.msk.msra.mxu0 %vm401_vm1, %v287_v3  ;;  %v180_v12 = vld [vmem:[%s511_s3] sm:$0xff]  ;;  %40 = vperm.xlu0 %337, %v36_v11  }
   0x6   :  { %295 = vmatprep.subr.msk.bf16.mxu0 %vm401_vm1, %v293_v7  ;;  %184 = vperm.xlu1 %338, %v180_v12  }
   0x7   :  { %9 = vsyncpa [#allocation3], 0  ;;  %v37_v13 = vld [vmem:[%s510_s2 + $0x8] sm:$0xff]  ;;  %v299_v15 = vpack.c.bf16 %v25_v10, %v24_v8  ;;  %v26_v16 = vld [vmem:[%s508_s0 + $0x30] sm:$0xff] }
   0x8   :  { %v181_v14 = vld [vmem:[%s511_s3 + $0x8] sm:$0xff]  ;;  %v27_v17 = vld [vmem:[%s508_s0 + $0x38] sm:$0xff]  ;;  %v28_v19 = vld [vmem:[%s508_s0 + $0x40] sm:$0xff] }
   0x9   :  { %45 = vperm.xlu0 %337, %v37_v13   ;;  %v305_v18 = vpack.c.bf16 %v27_v17, %v26_v16  ;;  %v29_v20 = vld [vmem:[%s508_s0 + $0x48] sm:$0xff]  ;;  %v30_v22 = vld [vmem:[%s508_s0 + $0x50] sm:$0xff]  ;;  %v31_v23 = vld [vmem:[%s508_s0 + $0x58] sm:$0xff] }
   0xa   :  { %189 = vperm.xlu1 %338, %v181_v14   ;;  %v311_v21 = vpack.c.bf16 %v29_v20, %v28_v19  ;;  %v317_v24 = vpack.c.bf16 %v31_v23, %v30_v22  ;;  %v32_v25 = vld [vmem:[%s508_s0 + $0x60] sm:$0xff]  ;;  %v33_v26 = vld [vmem:[%s508_s0 + $0x68] sm:$0xff]  ;;  %v34_v28 = vld [vmem:[%s508_s0 + $0x70] sm:$0xff] }
   0xb   :  { %v323_v27 = vpack.c.bf16 %v33_v26, %v32_v25  ;;  %v35_v29 = vld [vmem:[%s508_s0 + $0x78] sm:$0xff]  ;;  %v19_v31 = vld [vmem:[%s509_s1 + $0x8] sm:$0xff]  ;;  %s364_s0 = smov [#allocation2]  }
   0xc   :  { %v329_v30 = vpack.c.bf16 %v35_v29, %v34_v28  ;;  %s208_s1 = sshll.u32 %s364_s0, 4  ;;  %s209_s1 = int_to_ptr.vmem [resolvable:$true] %s208_s1 }
   0xd   :  { %298 = vmatpush3.bf16.xpose.msk.msra.mxu0 %vm401_vm1, %v293_v7  ;;  %s339_s5 = scalar_lea.vmem %s209_s1, 16  ;;  %s343_s6 = scalar_lea.vmem %s209_s1, 32 }
   0xe   :  { %301 = vmatprep.subr.msk.bf16.mxu0 %vm401_vm1, %v299_v15  ;;  %p340_p0 = scmp.ne.s32.totalorder %s209_s1, %s339_s5  ;;  %p344_p1 = scmp.lt.s32.totalorder %s209_s1, %s209_s1 }
   0xf   :  { %p345_p2 = scmp.lt.s32.totalorder %s343_s6, %s339_s5 }
  0x11   :  { %p346_p3 = por %p345_p2, %p344_p1 }
  0x13   :  { %p347_p4 = pnand %p346_p3, %p340_p0 }
  0x15   :  { %304 = vmatpush3.bf16.xpose.msk.msra.mxu0 %vm401_vm1, %v299_v15 }
  0x16   :  { %307 = vmatprep.subr.msk.bf16.mxu0 %vm401_vm1, %v305_v18 }
  0x1d   :  { %310 = vmatpush3.bf16.xpose.msk.msra.mxu0 %vm401_vm1, %v305_v18 }
  0x1e   :  { %313 = vmatprep.subr.msk.bf16.mxu0 %vm401_vm1, %v311_v21 }
  0x25   :  { %316 = vmatpush3.bf16.xpose.msk.msra.mxu0 %vm401_vm1, %v311_v21 }
  0x26   :  { %319 = vmatprep.subr.msk.bf16.mxu0 %vm401_vm1, %v317_v24 }
  0x2d   :  { %322 = vmatpush3.bf16.xpose.msk.msra.mxu0 %vm401_vm1, %v317_v24 }
  0x2e   :  { %325 = vmatprep.subr.msk.bf16.mxu0 %vm401_vm1, %v323_v27 }
  0x35   :  { %328 = vmatpush3.bf16.xpose.msk.msra.mxu0 %vm401_vm1, %v323_v27 }
  0x36   :  { %331 = vmatprep.subr.msk.bf16.mxu0 %vm401_vm1, %v329_v30 }
  0x3d   :  { %334 = vmatpush3.bf16.xpose.msk.msra.mxu0 %vm401_vm1, %v329_v30 }
  0x44   :  { %285 = vmatmul.mubr.msk.f32.vlgmr.msra.gmra.mrb[0].mxu0 %vm48_vm0, %v19_v31 }
  0x84   :  { %v41_v32 = vpop.permute.xlu0 %40 }
  0x85   :  { %v185_v33 = vpop.permute.xlu1 %184 }
  0x88   :  { %v46_v34 = vpop.permute.xlu0 %45 }
  0x89   :  { %v190_v40 = vpop.permute.xlu1 %189 }
 0x117   :  { %v286_v35 = vpop.f32.mrb[0].mxu0 }
 0x118   :  { %v175_v36 = vadd.f32 %v286_v35, %v46_v34  ;;  %v169_v37 = vpop.f32.mrb[1].mxu0 }
 0x119   :  { %v170_v38 = vadd.f32 %v169_v37, %v41_v32 }
 0x11a   :  { %v179_v39 = vmax.f32 %v175_v36, 0.0 }
 0x11b   :  { %v178_v41 = vmax.f32 %v170_v38, 0.0 }
 0x11c   :  { %v193_v42 = vmul.f32 %v190_v40, %v179_v39 }
 0x11d   :  { %v192_v43 = vmul.f32 %v185_v33, %v178_v41 }
 0x11f   :  { %v194_v44 = vadd.f32 %v193_v42, %v192_v43 }
 0x121   :  { %v195_v45 = vrot.slane %v194_v44, 4 }
 0x123   :  { %v196_v46 = vadd.f32 %v195_v45, %v194_v44 }
 0x125   :  { %v197_v47 = vrot.slane %v196_v46, 2 }
 0x127   :  { %v198_v48 = vadd.f32 %v197_v47, %v196_v46 }
 0x129   :  { %v199_v49 = vrot.slane %v198_v48, 1 }
 0x12b   :  { %v200_v50 = vadd.f32 %v199_v49, %v198_v48 }
 0x12d   :  { %201 = vst [vmem:[#allocation2] sm:$0x1] %v200_v50 }
 0x12e   :  { %350 = shalt.err (!%p347_p4)
}
 0x12f   :  { %s351_s9 = scalar_lea.hbm %s512_s4, 16 }
 0x130   :  { %p352_p5 = scmp.ne.s32.totalorder %s512_s4, %s351_s9  ;;  %p355_p6 = scmp.lt.u32.totalorder %s351_s9, %s512_s4 }
 0x132   :  { %p357_p7 = pnand %p355_p6, %p352_p5 }
 0x134   :  { %360 = shalt.err (!%p357_p7)
}
 0x135   :  { %211 = dma.vmem_to_hbm [thread:$0]  %s209_s1, 16, %s512_s4, [#allocation3]  }
 0x136   :  { %361 = dma.done.wait [#allocation3], 16  }
 0x137   :  { %362 = vsyncadd [#allocation3], 4294967280 }
 0x138   :  { %215 = vsyncpa [#allocation3], 1 }

</bundles_post_ra>
